<compile_context>
chip_gen: v6e
topology: v6e:2x2x1
jax: 0.10.0
libtpu: 0.0.40
codegen_flags: <defaults>
</compile_context>

<pallas_src>
import jax
import jax.numpy as jnp
from jax.experimental import pallas as pl
from jax.experimental.pallas import tpu as pltpu

N_EMBD = 64
MULTIPLE_OF = 128


def _hidden_dim(n_embd, multiple_of, ffn_dim_multiplier=None):
    hidden_dim = 4 * n_embd
    hidden_dim = int(2 * hidden_dim / 3)
    if ffn_dim_multiplier is not None:
        hidden_dim = int(ffn_dim_multiplier * hidden_dim)
    hidden_dim = multiple_of * ((hidden_dim + multiple_of - 1) // multiple_of)
    return hidden_dim


def fuse_mlp_weights(w_fc, w_fc2, w_proj):
    """One-time weight prep (call once at load time, NOT per forward pass).

    Takes PyTorch nn.Linear (out, in) layouts and returns
      w12: (E, 2H) bf16  = [W_fc.T | W_fc2.T]   (fused gate operand)
      wp:  (H, E)  bf16  = W_proj.T
    """
    w12 = jnp.concatenate(
        [jnp.asarray(w_fc).T, jnp.asarray(w_fc2).T], axis=1
    ).astype(jnp.bfloat16)
    wp = jnp.asarray(w_proj).T.astype(jnp.bfloat16)
    return w12, wp


def _mlp_kernel(x_ref, w12_ref, wp_ref, o_ref):
    # x_ref:   (tm, E)   f32  (cast to bf16 on the VPU here; slot is idle)
    # w12_ref: (E, 2H)   bf16 (resident across the grid)
    # wp_ref:  (H, E)    bf16 (resident across the grid)
    # o_ref:   (tm, E)   bf16
    H = wp_ref.shape[0]

    x = x_ref[...].astype(jnp.bfloat16)

    # Single fused gate matmul on the MXU, f32 accumulation.
    x12 = jnp.dot(x, w12_ref[...], preferred_element_type=jnp.float32)
    x1 = x12[:, :H]          # lane-tile aligned slices (H is a multiple of 128)
    x2 = x12[:, H:]

    # SwiGLU gate in f32 (VPU multiplies, EUP sigmoid) — v5e has no bf16
    # VPU/EUP path, and these slots are idle in a matmul-centric kernel.
    h = x1 * (x2 * jax.nn.sigmoid(x2))

    # Projection back to E: bf16 operands, f32 accumulation, bf16 store.
    o_ref[...] = jnp.dot(
        h.astype(wp_ref.dtype), wp_ref[...], preferred_element_type=jnp.float32
    ).astype(o_ref.dtype)


def mlp_forward(x, w12, wp, *, tm=None):
    """SwiGLU MLP forward.

    x:   (..., E)  float (cast to bf16 inside the kernel)
    w12: (E, 2H)   bf16 pre-fused gate weight (see fuse_mlp_weights)
    wp:  (H, E)    bf16 pre-transposed projection weight
    Returns (..., E) in bfloat16 (cast at the call site if f32 is required).
    """
    orig_shape = x.shape
    E = orig_shape[-1]
    H = wp.shape[0]
    assert w12.shape == (E, 2 * H) and wp.shape == (H, E)

    x2d = x.reshape(-1, E)
    M = x2d.shape[0]

    if tm is None:
        # Small M: one grid step covering all rows (block == full array is
        # always a legal block shape) — no padding, no forced tile split.
        # Large M: 512-row tiles (~85% of HBM roofline per measured data);
        # the (tm, 2H) f32 temporary is ~1 MiB, far under scoped-VMEM limits.
        tm = M if M <= 512 else 512

    grid_m = pl.cdiv(M, tm)
    # A ragged last tile (M % tm != 0) is handled by Pallas block masking; no
    # wrapper-side jnp.pad copy of the activations is made.

    cost = pl.CostEstimate(
        flops=6 * M * E * H,                 # (tm,E)@(E,2H) + (tm,H)@(H,E)
        transcendentals=M * H,               # sigmoid
        bytes_accessed=(M * E * 4            # f32 activations in
                        + 3 * E * H * 2      # bf16 weights (resident -> once)
                        + M * E * 2),        # bf16 output
    )

    out = pl.pallas_call(
        _mlp_kernel,
        out_shape=jax.ShapeDtypeStruct((M, E), jnp.bfloat16),
        grid_spec=pltpu.PrefetchScalarGridSpec(
            num_scalar_prefetch=0,
            grid=(grid_m,),
            in_specs=[
                pl.BlockSpec((tm, E), lambda i: (i, 0)),     # activations, row-tiled
                pl.BlockSpec((E, 2 * H), lambda i: (0, 0)),  # fused gate weight (resident)
                pl.BlockSpec((H, E), lambda i: (0, 0)),      # projection weight (resident)
            ],
            out_specs=pl.BlockSpec((tm, E), lambda i: (i, 0)),
        ),
        compiler_params=pltpu.CompilerParams(
            # Megacore: shard row tiles across TensorCores when grid_m > 1.
            dimension_semantics=("parallel",),
        ),
        cost_estimate=cost,
    )(x2d, w12, wp)

    return out.reshape(orig_shape)


def mlp_reference(x, w_fc, w_fc2, w_proj):
    x1 = x @ w_fc.T
    x2 = x @ w_fc2.T
    x2 = x2 * jax.nn.sigmoid(x2)
    return (x1 * x2) @ w_proj.T


if __name__ == "__main__":
    key = jax.random.PRNGKey(0)
    k_x, k_w1, k_w2, k_wp = jax.random.split(key, 4)

    B, S, E = 2, 8, N_EMBD
    H = _hidden_dim(E, MULTIPLE_OF)   # 256

    # Deterministic synthetic parameters (PyTorch nn.Linear shapes: (out, in)).
    scale_in = 1.0 / (E ** 0.5)
    scale_h = 1.0 / (H ** 0.5)
    w_fc = jax.random.uniform(k_w1, (H, E), jnp.float32, -scale_in, scale_in)
    w_fc2 = jax.random.uniform(k_w2, (H, E), jnp.float32, -scale_in, scale_in)
    w_proj = jax.random.uniform(k_wp, (E, H), jnp.float32, -scale_h, scale_h)

    x = jax.random.normal(k_x, (B, S, E), jnp.float32)

    # One-time weight fusion / transpose / bf16 cast (outside the per-call path).
    w12, wp = fuse_mlp_weights(w_fc, w_fc2, w_proj)

    out = jax.block_until_ready(mlp_forward(x, w12, wp))
    ref = mlp_reference(x, w_fc, w_fc2, w_proj)

    assert out.shape == (B, S, E)
    assert out.dtype == jnp.bfloat16
    # bf16 MXU operands + bf16 output (f32 accumulation) -> loosened tolerance.
    assert jnp.allclose(out.astype(jnp.float32), ref, atol=3e-2, rtol=3e-2), \
        "mismatch vs reference"

    print("KERNEL_OK")
</pallas_src>

<mosaic_0001>
module attributes {stable_mosaic.version = 11 : i64} {
  func.func @_mlp_kernel(%arg0: i32, %arg1: memref<16x64xf32, #tpu.memory_space<vmem>>, %arg2: memref<64x512xbf16, #tpu.memory_space<vmem>>, %arg3: memref<256x64xbf16, #tpu.memory_space<vmem>>, %arg4: memref<16x64xbf16, #tpu.memory_space<vmem>>) attributes {dimension_semantics = [#tpu.dimension_semantics<parallel>], iteration_bounds = array<i64: 1>, scalar_prefetch = 0 : i64, scratch_operands = 0 : i64, tpu.core_type = #tpu.core_type<tc>, window_params = [{transform_indices = @transform_0, window_bounds = array<i64: 16, 64>}, {pipeline_mode = #tpu.pipeline_mode<synchronous>, transform_indices = @transform_1, window_bounds = array<i64: 64, 512>}, {pipeline_mode = #tpu.pipeline_mode<synchronous>, transform_indices = @transform_2, window_bounds = array<i64: 256, 64>}, {transform_indices = @transform_3, window_bounds = array<i64: 16, 64>}]} {
    %c0 = arith.constant 0 : index
    %c0_0 = arith.constant 0 : index
    %0 = vector.load %arg1[%c0, %c0_0] : memref<16x64xf32, #tpu.memory_space<vmem>>, vector<16x64xf32>
    %1 = arith.truncf %0 : vector<16x64xf32> to vector<16x64xbf16>
    %c0_1 = arith.constant 0 : index
    %c0_2 = arith.constant 0 : index
    %2 = vector.load %arg2[%c0_1, %c0_2] : memref<64x512xbf16, #tpu.memory_space<vmem>>, vector<64x512xbf16>
    %cst = arith.constant dense<0.000000e+00> : vector<16x512xf32>
    %3 = tpu.matmul %1, %2, %cst {dimension_numbers = #tpu.dot_dimension_numbers<[1], [0], [0], [1], [0, 0, 1, 1], [], []>} : vector<16x64xbf16>, vector<64x512xbf16>, vector<16x512xf32> -> vector<16x512xf32>
    %4 = vector.extract_strided_slice %3 {offsets = [0, 0], sizes = [16, 256], strides = [1, 1]} : vector<16x512xf32> to vector<16x256xf32>
    %5 = vector.extract_strided_slice %3 {offsets = [0, 256], sizes = [16, 256], strides = [1, 1]} : vector<16x512xf32> to vector<16x256xf32>
    %6 = arith.negf %5 : vector<16x256xf32>
    %7 = math.exp %6 : vector<16x256xf32>
    %cst_3 = arith.constant 1.000000e+00 : f32
    %8 = vector.broadcast %cst_3 : f32 to vector<16x256xf32>
    %9 = arith.addf %8, %7 : vector<16x256xf32>
    %10 = arith.divf %8, %9 : vector<16x256xf32>
    %11 = arith.mulf %5, %10 : vector<16x256xf32>
    %12 = arith.mulf %4, %11 : vector<16x256xf32>
    %13 = arith.truncf %12 : vector<16x256xf32> to vector<16x256xbf16>
    %c0_4 = arith.constant 0 : index
    %c0_5 = arith.constant 0 : index
    %14 = vector.load %arg3[%c0_4, %c0_5] : memref<256x64xbf16, #tpu.memory_space<vmem>>, vector<256x64xbf16>
    %cst_6 = arith.constant dense<0.000000e+00> : vector<16x64xf32>
    %15 = tpu.matmul %13, %14, %cst_6 {dimension_numbers = #tpu.dot_dimension_numbers<[1], [0], [0], [1], [0, 0, 1, 1], [], []>} : vector<16x256xbf16>, vector<256x64xbf16>, vector<16x64xf32> -> vector<16x64xf32>
    %16 = arith.truncf %15 : vector<16x64xf32> to vector<16x64xbf16>
    %c0_7 = arith.constant 0 : index
    %c0_8 = arith.constant 0 : index
    %17 = vector.load %arg4[%c0_7, %c0_8] : memref<16x64xbf16, #tpu.memory_space<vmem>>, vector<16x64xbf16>
    tpu.vector_store %arg4[%c0_7, %c0_8], %16 {strides = array<i32>} : memref<16x64xbf16, #tpu.memory_space<vmem>>, vector<16x64xbf16>,
    return
  }
  func.func @transform_0(%arg0: i32) -> (i32, i32) {
    %c0_i32 = arith.constant 0 : i32
    %c0_i32_0 = arith.constant 0 : i32
    return %arg0, %c0_i32 : i32, i32
  }
  func.func @transform_1(%arg0: i32) -> (i32, i32) {
    %c0_i32 = arith.constant 0 : i32
    %c0_i32_0 = arith.constant 0 : i32
    %c0_i32_1 = arith.constant 0 : i32
    return %c0_i32, %c0_i32_0 : i32, i32
  }
  func.func @transform_2(%arg0: i32) -> (i32, i32) {
    %c0_i32 = arith.constant 0 : i32
    %c0_i32_0 = arith.constant 0 : i32
    %c0_i32_1 = arith.constant 0 : i32
    return %c0_i32, %c0_i32_0 : i32, i32
  }
  func.func @transform_3(%arg0: i32) -> (i32, i32) {
    %c0_i32 = arith.constant 0 : i32
    %c0_i32_0 = arith.constant 0 : i32
    return %arg0, %c0_i32 : i32, i32
  }
}

</mosaic_0001>

<bundles_post_ra>
// kernel: tpu_custom_call.1
= control target key start
LH: loop header
LB: loop body
LE: loop exit
PB: predicated region body
PF: predicated region fallthrough
CT: control target
= control target key end

     0   :  { %v581_v2 = vmov 0   ;;  %vm115_vm0 = vcmask 523264   ;;  %s712_s0 = inlined_call_operand.vmem [shape: f32[16,64], index: 0, kind: input, shape index: {}]   ;;  %s713_s1 = inlined_call_operand.vmem [shape: bf16[64,512], index: 1, kind: input, shape index: {}]   ;;  %s714_s2 = inlined_call_operand.vmem [shape: bf16[256,64], index: 2, kind: input, shape index: {}]   ;;  %s715_s3 = inlined_call_operand.hbm [shape: bf16[16,64], index: 3, kind: output, shape index: {}]  }
   0x1   :  { %v503_v0 = vld [vmem:[%s713_s1 + $0x64] ss:$16 sps:$4 sm:$0xff]   ;;  %v505_v1 = vld [vmem:[%s713_s1 + $0x60] ss:$16 sps:$4 sm:$0xff]   ;;  %151 = vmatprep.mubr.bf16.mxu1 %v581_v2  ;;  %v17_v10 = vld [vmem:[%s712_s0 + $0x8] sm:$0xff] }
   0x2   :  { %127 = vmatprep.subr.bf16.mxu1 %v503_v0  ;;  %v506_v3 = vld [vmem:[%s713_s1 + $0x44] ss:$16 sps:$4 sm:$0xff]   ;;  %v508_v4 = vld [vmem:[%s713_s1 + $0x40] ss:$16 sps:$4 sm:$0xff]   ;;  %v517_v11 = vld [vmem:[%s713_s1 + $0x6c] ss:$16 sps:$4 sm:$0xff]  }
   0x3   :  { %128 = vmatpush1.bf16.msra.mxu1 %v505_v1  ;;  %v509_v5 = vld [vmem:[%s713_s1 + $0x24] ss:$16 sps:$4 sm:$0xff]   ;;  %v511_v6 = vld [vmem:[%s713_s1 + $0x20] ss:$16 sps:$4 sm:$0xff]   ;;  %v515_v12 = vld [vmem:[%s713_s1 + $0x68] ss:$16 sps:$4 sm:$0xff]  }
   0x4   :  { %129 = vmatprep.subr.bf16.mxu1 %v506_v3  ;;  %v512_v7 = vld [vmem:[%s713_s1 + $0x4] ss:$16 sps:$4 sm:$0xff]   ;;  %v514_v8 = vld [vmem:[%s713_s1] ss:$16 sps:$4 sm:$0xff]   ;;  %v520_v14 = vld [vmem:[%s713_s1 + $0x4c] ss:$16 sps:$4 sm:$0xff]  }
   0x5   :  { %v16_v9 = vld [vmem:[%s712_s0] sm:$0xff]  ;;  %v518_v15 = vld [vmem:[%s713_s1 + $0x48] ss:$16 sps:$4 sm:$0xff]   ;;  %v523_v16 = vld [vmem:[%s713_s1 + $0x2c] ss:$16 sps:$4 sm:$0xff]  }
   0x6   :  { %v18_v13 = vpack.c.bf16 %v17_v10, %v16_v9 }
   0x7   :  { %130 = vmatpush1.bf16.msra.mxu1 %v508_v4 }
   0x8   :  { %131 = vmatprep.subr.bf16.mxu1 %v509_v5 }
   0xb   :  { %132 = vmatpush1.bf16.msra.mxu1 %v511_v6 }
   0xc   :  { %133 = vmatprep.subr.bf16.mxu1 %v512_v7 }
   0xf   :  { %134 = vmatpush1.bf16.msra.mxu1 %v514_v8 }
  0x10   :  { %170 = vmatprep.subr.bf16.mxu1 %v517_v11 }
  0x12   :  { %451 = vmatmul.mubr.msk.bf16.vlgmr.msra.gmra.mxu1 %vm115_vm0, %v18_v13 }
  0x13   :  { %171 = vmatpush1.bf16.msra.mxu1 %v515_v12  ;;  %194 = vmatprep.mubr.bf16.mxu1 %v581_v2 }
  0x14   :  { %172 = vmatprep.subr.bf16.mxu1 %v520_v14 }
  0x15   :  { %8 = vsyncpa [#allocation3], 0  ;;  %v521_v17 = vld [vmem:[%s713_s1 + $0x28] ss:$16 sps:$4 sm:$0xff]   ;;  %v526_v18 = vld [vmem:[%s713_s1 + $0xc] ss:$16 sps:$4 sm:$0xff]  }
  0x16   :  { %v524_v19 = vld [vmem:[%s713_s1 + $0x8] ss:$16 sps:$4 sm:$0xff]   ;;  %v529_v22 = vld [vmem:[%s714_s2 + $0x70] sm:$0xff]   ;;  %v533_v26 = vld [vmem:[%s714_s2 + $0x60] sm:$0xff]   ;;  %vm416_vm1 = vcmask 519168  }
  0x17   :  { %173 = vmatpush1.bf16.msra.mxu1 %v518_v15  ;;  %v527_v20 = vld [vmem:[%s714_s2 + $0x78] sm:$0xff]   ;;  %v530_v23 = vld [vmem:[%s714_s2 + $0x30] sm:$0xff]   ;;  %v531_v24 = vld [vmem:[%s714_s2 + $0x68] sm:$0xff]  }
  0x18   :  { %174 = vmatprep.subr.bf16.mxu1 %v523_v16  ;;  %v528_v21 = vld [vmem:[%s714_s2 + $0x38] sm:$0xff]   ;;  %477 = vmatprep.subr.bf16.mxu0 %v527_v20  ;;  %v532_v25 = vld [vmem:[%s714_s2 + $0x28] sm:$0xff]   ;;  %v534_v27 = vld [vmem:[%s714_s2 + $0x20] sm:$0xff]  }
  0x19   :  { %478 = vmatpush3.bf16.msra.mxu0 %v528_v21  ;;  %v535_v28 = vld [vmem:[%s714_s2 + $0x58] sm:$0xff]   ;;  %v537_v30 = vld [vmem:[%s714_s2 + $0x50] sm:$0xff]   ;;  %v539_v32 = vld [vmem:[%s714_s2 + $0x48] sm:$0xff]  }
  0x1a   :  { %479 = vmatprep.subr.bf16.mxu0 %v529_v22  ;;  %v536_v29 = vld [vmem:[%s714_s2 + $0x18] sm:$0xff]   ;;  %v538_v31 = vld [vmem:[%s714_s2 + $0x10] sm:$0xff]   ;;  %v540_v33 = vld [vmem:[%s714_s2 + $0x8] sm:$0xff]  }
  0x1b   :  { %175 = vmatpush1.bf16.msra.mxu1 %v521_v17  ;;  %v541_v34 = vld [vmem:[%s714_s2 + $0x40] sm:$0xff]  }
  0x1c   :  { %176 = vmatprep.subr.bf16.mxu1 %v526_v18  ;;  %v542_v35 = vld [vmem:[%s714_s2] sm:$0xff]   ;;  %s582_s2 = smov [#allocation2]  }
  0x1d   :  { %480 = vmatpush3.bf16.msra.mxu0 %v530_v23  ;;  %s424_s23 = sshll.u32 %s582_s2, 4  ;;  %s425_s23 = int_to_ptr.vmem [resolvable:$true] %s424_s23 }
  0x1e   :  { %481 = vmatprep.subr.bf16.mxu0 %v531_v24  ;;  %s559_s24 = scalar_lea.vmem %s425_s23, 128  ;;  %p564_p1 = scmp.lt.s32.totalorder %s425_s23, %s425_s23 }
  0x1f   :  { %177 = vmatpush1.bf16.msra.mxu1 %v524_v19  ;;  %p560_p0 = scmp.ne.s32.totalorder %s425_s23, %s559_s24  ;;  %p565_p2 = scmp.lt.s32.totalorder %s559_s24, %s559_s24 }
  0x21   :  { %482 = vmatpush3.bf16.msra.mxu0 %v532_v25  ;;  %p566_p3 = por %p565_p2, %p564_p1 }
  0x22   :  { %452 = vmatmul.mubr.msk.bf16.vlgmr.msra.gmra.mxu1 %vm115_vm0, %v18_v13  ;;  %483 = vmatprep.subr.bf16.mxu0 %v533_v26 }
  0x23   :  { %p567_p4 = pnand %p566_p3, %p560_p0 }
  0x25   :  { %484 = vmatpush3.bf16.msra.mxu0 %v534_v27 }
  0x26   :  { %485 = vmatprep.subr.bf16.mxu0 %v535_v28 }
  0x29   :  { %486 = vmatpush3.bf16.msra.mxu0 %v536_v29 }
  0x2a   :  { %487 = vmatprep.subr.bf16.mxu0 %v537_v30 }
  0x2d   :  { %488 = vmatpush3.bf16.msra.mxu0 %v538_v31 }
  0x2e   :  { %489 = vmatprep.subr.bf16.mxu0 %v539_v32 }
  0x31   :  { %490 = vmatpush3.bf16.msra.mxu0 %v540_v33 }
  0x32   :  { %491 = vmatprep.subr.bf16.mxu0 %v541_v34 }
  0x35   :  { %492 = vmatpush3.bf16.msra.mxu0 %v542_v35 }
  0xd2   :  { %v153_v36 = vpop.f32.mrf.mxu1 }
  0xd4   :  { %v155_v37 = vpop.f32.mrf.mxu1 }
  0xd6   :  { %v157_v38 = vpop.f32.mrf.mxu1 }
  0xd8   :  { %v159_v39 = vpop.f32.mrf.mxu1 }
  0xe2   :  { %v196_v40 = vpop.f32.mrf.mxu1 }
  0xe3   :  { %v453_v41 = vmul.f32 -1.442695, %v196_v40 }
  0xe4   :  { %v198_v42 = vpop.f32.mrf.mxu1 }
  0xe5   :  { %543 = vpow2.f32 %v453_v41  ;;  %v454_v43 = vmul.f32 -1.442695, %v198_v42 }
  0xe6   :  { %v200_v44 = vpop.f32.mrf.mxu1 }
  0xe7   :  { %545 = vpow2.f32 %v454_v43  ;;  %v455_v45 = vmul.f32 -1.442695, %v200_v44 }
  0xe8   :  { %v202_v46 = vpop.f32.mrf.mxu1 }
  0xe9   :  { %547 = vpow2.f32 %v455_v45  ;;  %v456_v47 = vmul.f32 -1.442695, %v202_v46 }
  0xeb   :  { %549 = vpow2.f32 %v456_v47 }
  0xf2   :  { %v544_v48 = vpop.eup %543 }
  0xf3   :  { %v217_v50 = vadd.f32 1.0, %v544_v48 }
  0xf4   :  { %v546_v49 = vpop.eup %545 }
  0xf5   :  { %v218_v51 = vadd.f32 1.0, %v546_v49 }
  0xf6   :  { %v548_v52 = vpop.eup %547 }
  0xf7   :  { %551 = vrcp.f32 %v218_v51  ;;  %v219_v53 = vadd.f32 1.0, %v548_v52 }
  0xf8   :  { %v550_v54 = vpop.eup %549  ;;  %553 = vrcp.f32 %v217_v50 }
  0xf9   :  { %555 = vrcp.f32 %v219_v53  ;;  %v220_v55 = vadd.f32 1.0, %v550_v54 }
  0xfb   :  { %557 = vrcp.f32 %v220_v55 }
 0x104   :  { %v552_v56 = vpop.eup %551 }
 0x105   :  { %v554_v57 = vpop.eup %553  ;;  %v230_v59 = vmul.f32 %v552_v56, %v198_v42 }
 0x106   :  { %v556_v58 = vpop.eup %555  ;;  %v229_v62 = vmul.f32 %v554_v57, %v196_v40 }
 0x107   :  { %v231_v60 = vmul.f32 %v556_v58, %v200_v44  ;;  %v234_v1 = vmul.f32 %v230_v59, %v155_v37 }
 0x108   :  { %v558_v61 = vpop.eup %557  ;;  %v233_v3 = vmul.f32 %v229_v62, %v153_v36 }
 0x109   :  { %v232_v63 = vmul.f32 %v558_v61, %v202_v46  ;;  %v235_v0 = vmul.f32 %v231_v60, %v157_v38 }
 0x10b   :  { %v236_v2 = vmul.f32 %v232_v63, %v159_v39  ;;  %v237_v5 = vpack.c.bf16 %v235_v0, %v233_v3 }
 0x10d   :  { %v238_v4 = vpack.c.bf16 %v236_v2, %v234_v1 }
 0x10f   :  { %399 = vmatprep.mubr.bf16.mxu0 %v238_v4 }
 0x110   :  { %400 = vmatmul.mubr.bf16.vlgmr.msra.gmra.mxu0 %v237_v5 }
 0x1d0   :  { %v493_v6 = vpop.f32.mrf.mxu0 }
 0x1d2   :  { %v494_v7 = vpop.f32.mrf.mxu0 }
 0x1d3   :  { %v495_v8 = vadd.f32 %v494_v7, %v493_v6 }
 0x1d4   :  { %v496_v9 = vpop.f32.mrf.mxu0 }
 0x1d5   :  { %v475_v10 = vpack.c.bf16 %v495_v8, %v495_v8 }
 0x1d6   :  { %v497_v11 = vpop.f32.mrf.mxu0 }
 0x1d7   :  { %417 = vst.msk [vmem:[#allocation2] sm:$0xf] %vm416_vm1, %v475_v10  ;;  %v498_v12 = vadd.f32 %v497_v11, %v496_v9 }
 0x1d9   :  { %v476_v13 = vpack.c.bf16 %v498_v12, %v498_v12 }
 0x1db   :  { %418 = vst.msk [vmem:[#allocation2 + $0x4] sm:$0xf] %vm416_vm1, %v476_v13 }
 0x1dc   :  { %570 = shalt.err (!%p567_p4)
}
 0x1dd   :  { %s583_s25 = smov 64   ;;  %s584_s26 = smov 4  }
 0x1de   :  { %430 = dma.vmem_to_hbm [thread:$0]  %s425_s23, 128, %s715_s3, [#allocation3], %s583_s25, %s583_s25, %s584_s26  }
 0x1df   :  { %579 = dma.done.wait [#allocation3], 128  }
 0x1e0   :  { %580 = vsyncadd [#allocation3], 4294967168 }
 0x1e1   :  { %434 = vsyncpa [#allocation3], 1 }

</bundles_post_ra>
